<compile_context>
chip_gen: v7x
topology: tpu7x:2x2x1
jax: 0.10.0
libtpu: 0.0.40
codegen_flags: <defaults>
</compile_context>

<pallas_src>
import functools

import jax
import jax.numpy as jnp
from jax.experimental import pallas as pl
from jax.experimental.pallas import tpu as pltpu


# ---------------------------------------------------------------------------
# Tile helpers
# ---------------------------------------------------------------------------

def _edge_tile(dim, target, align):
    """Tile for a non-reduction axis.  Full dim if small; otherwise the aligned
    target -- pl.cdiv grids mask the ragged last block (its garbage rows/cols
    are never written back), so no divisibility search that could collapse to
    tiny MXU-starving tiles."""
    if dim <= target:
        return dim
    return max(align, (target // align) * align)


def _divisor_tile(dim, target, align):
    """Tile that must divide `dim` exactly (reduction axes / in-kernel row
    slices).  Falls back to the full dim when no aligned divisor exists."""
    if dim <= target:
        return dim
    t = (target // align) * align
    while t >= align:
        if dim % t == 0:
            return t
        t -= align
    # TODO(synk): pad + mask instead of going fully resident for huge dims.
    return dim


# ---------------------------------------------------------------------------
# Tiled projection matmul (QKV), K-axis accumulation, bf16 MXU operands
# ---------------------------------------------------------------------------

def _matmul_kernel(x_ref, w_ref, o_ref, acc_ref, *, compute_dtype):
    @pl.when(pl.program_id(2) == 0)
    def _():
        acc_ref[...] = jnp.zeros_like(acc_ref)

    acc_ref[...] += jnp.dot(x_ref[...].astype(compute_dtype),
                            w_ref[...].astype(compute_dtype),
                            preferred_element_type=jnp.float32)

    @pl.when(pl.program_id(2) == pl.num_programs(2) - 1)
    def _():
        o_ref[...] = acc_ref[...].astype(o_ref.dtype)


def _pallas_matmul(x2d, w, *, out_dtype, compute_dtype,
                   tm_target=256, tn_target=256, tk_target=512):
    """x2d: (M, K); w: (K, N) already in (in, out) layout, already compute_dtype."""
    M, K = x2d.shape
    K2, N = w.shape
    assert K == K2

    # NOTE: v6e (128 MiB VMEM) profits from tm=tn=512, tk=1024; these defaults
    # are kept modest so the double-buffered working set also fits v7x (64 MiB).
    tm = _edge_tile(M, tm_target, 8)
    tn = _edge_tile(N, tn_target, 128)
    tk = _divisor_tile(K, tk_target, 128)
    grid = (pl.cdiv(M, tm), pl.cdiv(N, tn), K // tk)

    kernel = functools.partial(_matmul_kernel, compute_dtype=compute_dtype)
    return pl.pallas_call(
        kernel,
        out_shape=jax.ShapeDtypeStruct((M, N), out_dtype),
        grid=grid,
        in_specs=[pl.BlockSpec((tm, tk), lambda i, j, k: (i, k)),
                  pl.BlockSpec((tk, tn), lambda i, j, k: (k, j))],
        out_specs=pl.BlockSpec((tm, tn), lambda i, j, k: (i, j)),
        scratch_shapes=[pltpu.VMEM((tm, tn), jnp.float32)],
        compiler_params=pltpu.CompilerParams(
            dimension_semantics=("parallel", "parallel", "arbitrary")),
    )(x2d, w)


# ---------------------------------------------------------------------------
# Fused attention + output-projection kernel
#   grid = (batch, query-tile); QKV block resident per batch, W_proj resident
#   for the whole grid; output written as one lane-dense (TQ, D) block.
# ---------------------------------------------------------------------------

def _attention_proj_kernel(qkv_ref, wproj_ref, bproj_ref, o_ref, *,
                           num_heads, scale, tq, compute_dtype):
    # qkv_ref : (1, N, 3D) in nn.Linear output order [q_h0..q_hH | k_... | v_...]
    # wproj_ref: (D, D) (in, out) layout; bproj_ref: (1, D); o_ref: (1, TQ, D)
    D = wproj_ref.shape[0]
    hd = D // num_heads
    q0 = pl.multiple_of(pl.program_id(1) * tq, tq)

    outs = []
    for h in range(num_heads):  # static loop, static lane slices per head
        # TODO(synk): on v6e/v7x with hd=64 pair heads per iteration for
        # 128-lane-dense slices and a fuller MXU contraction.
        q = qkv_ref[0, pl.ds(q0, tq), h * hd:(h + 1) * hd]
        k = qkv_ref[0, :, D + h * hd:D + (h + 1) * hd]
        v = qkv_ref[0, :, 2 * D + h * hd:2 * D + (h + 1) * hd]

        # Scale q (O(TQ*hd)) rather than the scores (O(TQ*N)).
        qs = (q.astype(jnp.float32) * scale).astype(compute_dtype)

        # Contract last dims directly -- no materialized k.T (keeps XLU free).
        s = jax.lax.dot_general(
            qs, k.astype(compute_dtype),
            dimension_numbers=(((1,), (1,)), ((), ())),
            preferred_element_type=jnp.float32)                  # (TQ, N)

        s = s - jnp.max(s, axis=-1, keepdims=True)               # safe softmax
        p = jnp.exp(s)
        # Exact divide: pl.reciprocal(approx=True) rounds through bf16 and was
        # the source of the previous reference mismatch.
        p = p / jnp.sum(p, axis=-1, keepdims=True)

        o_h = jnp.dot(p.astype(compute_dtype), v.astype(compute_dtype),
                      preferred_element_type=jnp.float32)        # (TQ, hd)
        # Cast as produced -> bounds vreg pressure before the concatenate.
        outs.append(o_h.astype(compute_dtype))

    attn = jnp.concatenate(outs, axis=-1)                        # (TQ, D)

    # Fused output projection + bias (W_proj stays VMEM resident).
    out = jnp.dot(attn, wproj_ref[...], preferred_element_type=jnp.float32)
    out = out + bproj_ref[...].astype(jnp.float32)
    o_ref[0] = out.astype(o_ref.dtype)                           # lane-dense store


def _pallas_attention_proj(qkv, w_proj_t, b_proj, *, num_heads, scale,
                           out_dtype, compute_dtype):
    # qkv: (B, N, 3D) -> (B, N, D)
    B, N, D3 = qkv.shape
    D = D3 // 3

    # Query tile: caps the live score matrix at TQ x N and gives the grid
    # enough steps for megacore sharding even when B is small.
    tq = _divisor_tile(N, 128, 8)
    nq = N // tq

    # Scoped-VMEM budget: double-buffered qkv block + resident W_proj + out
    # blocks + rough in-kernel live-array estimate.  v5e's 16 MiB default is
    # the binding constraint; cap at 64 MiB (v7x physical VMEM).
    qkv_item = jnp.dtype(qkv.dtype).itemsize
    w_item = jnp.dtype(w_proj_t.dtype).itemsize
    need = (2 * N * D3 * qkv_item
            + D * D * w_item + D * 4
            + 2 * tq * D * 4
            + 4 * tq * (N + D) * 4)
    vmem_limit = int(min(max(32 * 1024 * 1024, 2 * need), 64 * 1024 * 1024))

    kernel = functools.partial(_attention_proj_kernel, num_heads=num_heads,
                               scale=scale, tq=tq, compute_dtype=compute_dtype)
    return pl.pallas_call(
        kernel,
        out_shape=jax.ShapeDtypeStruct((B, N, D), out_dtype),
        grid=(B, nq),
        in_specs=[
            pl.BlockSpec((1, N, D3), lambda b, qi: (b, 0, 0)),   # resident per b
            pl.BlockSpec((D, D), lambda b, qi: (0, 0)),          # resident W_proj
            pl.BlockSpec((1, D), lambda b, qi: (0, 0)),          # resident bias
        ],
        out_specs=pl.BlockSpec((1, tq, D), lambda b, qi: (b, qi, 0)),
        compiler_params=pltpu.CompilerParams(
            dimension_semantics=("parallel", "parallel"),
            vmem_limit_bytes=vmem_limit),
    )(qkv, w_proj_t, b_proj)


# ---------------------------------------------------------------------------
# Forward pass
# ---------------------------------------------------------------------------

def prepare_params(pt_params, compute_dtype=jnp.bfloat16):
    """One-time conversion of PyTorch nn.Linear (out, in) weights to (in, out)
    layout and the MXU compute dtype (halves weight DMA bytes for bf16)."""
    return {
        "w_qkv_t": jnp.asarray(pt_params["w_qkv"]).T.astype(compute_dtype),   # (D, 3D)
        "w_proj_t": jnp.asarray(pt_params["w_proj"]).T.astype(compute_dtype), # (D, D)
        "b_proj": jnp.asarray(pt_params["b_proj"]).astype(jnp.float32).reshape(1, -1),
    }


def self_attention_forward(x, params, num_heads, *, compute_dtype=jnp.bfloat16):
    """Pallas forward of 自注意力.  x: (B, N, D) float32."""
    B, N, D = x.shape
    hd = D // num_heads
    scale = float(hd) ** -0.5

    # QKV projection (no bias): (B*N, D) @ (D, 3D); intermediate stored in the
    # compute dtype to halve its HBM traffic.
    qkv = _pallas_matmul(x.reshape(B * N, D), params["w_qkv_t"],
                         out_dtype=compute_dtype, compute_dtype=compute_dtype)
    qkv = qkv.reshape(B, N, 3 * D)           # pure reshape, no copy

    # Fused attention + output projection + bias (dropouts are 0.0 -> identity).
    out = _pallas_attention_proj(qkv, params["w_proj_t"], params["b_proj"],
                                 num_heads=num_heads, scale=scale,
                                 out_dtype=x.dtype, compute_dtype=compute_dtype)
    return out


# ---------------------------------------------------------------------------
# Pure-JAX reference (PyTorch-convention weights, full f32 precision)
# ---------------------------------------------------------------------------

def reference_forward(x, pt_params, num_heads):
    with jax.default_matmul_precision("highest"):
        B, N, D = x.shape
        hd = D // num_heads
        scale = float(hd) ** -0.5
        qkv = x @ pt_params["w_qkv"].T
        qkv = qkv.reshape(B, N, 3, num_heads, hd).transpose(2, 0, 3, 1, 4)
        q, k, v = qkv[0], qkv[1], qkv[2]
        s = jnp.einsum("bhqd,bhkd->bhqk", q, k) * scale
        p = jax.nn.softmax(s, axis=-1)
        o = jnp.einsum("bhqk,bhkd->bhqd", p, v)
        o = o.transpose(0, 2, 1, 3).reshape(B, N, D)
        return o @ pt_params["w_proj"].T + pt_params["b_proj"]


# ---------------------------------------------------------------------------
# Main
# ---------------------------------------------------------------------------

if __name__ == "__main__":
    B, N, D = 2, 8, 32          # batch, patches (seq), embed_dim
    num_heads = 4               # 注意力头数量 -> head_dim = 8

    key = jax.random.PRNGKey(0)
    kx, kw1, kw2, kb2 = jax.random.split(key, 4)

    x = jax.random.normal(kx, (B, N, D), dtype=jnp.float32)

    # PyTorch-convention parameters (nn.Linear weight is (out_features, in_features))
    pt_params = {
        "w_qkv": jax.random.normal(kw1, (3 * D, D), dtype=jnp.float32) * (D ** -0.5),
        "w_proj": jax.random.normal(kw2, (D, D), dtype=jnp.float32) * (D ** -0.5),
        "b_proj": jax.random.normal(kb2, (D,), dtype=jnp.float32) * 0.02,
    }

    ref = reference_forward(x, pt_params, num_heads)

    # 1) Full-f32 compute path: tight structural/numerical check.
    params_f32 = prepare_params(pt_params, compute_dtype=jnp.float32)
    out_f32 = jax.block_until_ready(
        self_attention_forward(x, params_f32, num_heads,
                               compute_dtype=jnp.float32))
    assert out_f32.shape == (B, N, D)
    err_f32 = float(jnp.max(jnp.abs(out_f32 - ref)))
    assert jnp.allclose(out_f32, ref, atol=5e-3, rtol=5e-3), \
        f"f32 path mismatch vs reference (max|diff|={err_f32})"

    # 2) bf16 MXU-operand path (production config per perf review): tolerance
    #    relaxed for bf16 operand rounding (f32 accumulation throughout).
    params_bf16 = prepare_params(pt_params, compute_dtype=jnp.bfloat16)
    out_bf16 = jax.block_until_ready(
        self_attention_forward(x, params_bf16, num_heads,
                               compute_dtype=jnp.bfloat16))
    assert out_bf16.shape == (B, N, D)
    err_bf16 = float(jnp.max(jnp.abs(out_bf16 - ref)))
    assert jnp.allclose(out_bf16, ref, atol=5e-2, rtol=5e-2), \
        f"bf16 path mismatch vs reference (max|diff|={err_bf16})"

    print("KERNEL_OK")
</pallas_src>

<mosaic_0001>
module attributes {stable_mosaic.version = 11 : i64} {
  func.func @_matmul_kernel(%arg0: i32, %arg1: i32, %arg2: i32, %arg3: memref<16x32xf32, #tpu.memory_space<vmem>>, %arg4: memref<32x96xf32, #tpu.memory_space<vmem>>, %arg5: memref<16x96xf32, #tpu.memory_space<vmem>>, %arg6: memref<16x96xf32, #tpu.memory_space<vmem>>) attributes {dimension_semantics = [#tpu.dimension_semantics<parallel>, #tpu.dimension_semantics<parallel>, #tpu.dimension_semantics<arbitrary>], iteration_bounds = array<i64: 1, 1, 1>, scalar_prefetch = 0 : i64, scratch_operands = 1 : i64, tpu.core_type = #tpu.core_type<tc>, window_params = [{transform_indices = @transform_0, window_bounds = array<i64: 16, 32>}, {transform_indices = @transform_1, window_bounds = array<i64: 32, 96>}, {transform_indices = @transform_2, window_bounds = array<i64: 16, 96>}]} {
    %c0_i32 = arith.constant 0 : i32
    %0 = arith.cmpi eq, %arg2, %c0_i32 : i32
    %1 = arith.extui %0 : i1 to i32
    %c0_i32_0 = arith.constant 0 : i32
    %2 = arith.cmpi ne, %1, %c0_i32_0 : i32
    scf.if %2 {
      %cst_10 = arith.constant 0.000000e+00 : f32
      %12 = vector.broadcast %cst_10 : f32 to vector<16x96xf32>
      %c0_11 = arith.constant 0 : index
      %c0_12 = arith.constant 0 : index
      %13 = vector.load %arg6[%c0_11, %c0_12] : memref<16x96xf32, #tpu.memory_space<vmem>>, vector<16x96xf32>
      tpu.vector_store %arg6[%c0_11, %c0_12], %12 {strides = array<i32>} : memref<16x96xf32, #tpu.memory_space<vmem>>, vector<16x96xf32>,
    } else {
    }
    %c0 = arith.constant 0 : index
    %c0_1 = arith.constant 0 : index
    %3 = vector.load %arg6[%c0, %c0_1] : memref<16x96xf32, #tpu.memory_space<vmem>>, vector<16x96xf32>
    %c0_2 = arith.constant 0 : index
    %c0_3 = arith.constant 0 : index
    %4 = vector.load %arg3[%c0_2, %c0_3] : memref<16x32xf32, #tpu.memory_space<vmem>>, vector<16x32xf32>
    %c0_4 = arith.constant 0 : index
    %c0_5 = arith.constant 0 : index
    %5 = vector.load %arg4[%c0_4, %c0_5] : memref<32x96xf32, #tpu.memory_space<vmem>>, vector<32x96xf32>
    %cst = arith.constant dense<0.000000e+00> : vector<16x96xf32>
    %6 = tpu.matmul %4, %5, %cst {dimension_numbers = #tpu.dot_dimension_numbers<[1], [0], [0], [1], [0, 0, 1, 1], [], []>} : vector<16x32xf32>, vector<32x96xf32>, vector<16x96xf32> -> vector<16x96xf32>
    %7 = arith.addf %3, %6 : vector<16x96xf32>
    %c0_6 = arith.constant 0 : index
    %c0_7 = arith.constant 0 : index
    %8 = vector.load %arg6[%c0_6, %c0_7] : memref<16x96xf32, #tpu.memory_space<vmem>>, vector<16x96xf32>
    tpu.vector_store %arg6[%c0_6, %c0_7], %7 {strides = array<i32>} : memref<16x96xf32, #tpu.memory_space<vmem>>, vector<16x96xf32>,
    %c0_i32_8 = arith.constant 0 : i32
    %9 = arith.cmpi eq, %arg2, %c0_i32_8 : i32
    %10 = arith.extui %9 : i1 to i32
    %c0_i32_9 = arith.constant 0 : i32
    %11 = arith.cmpi ne, %10, %c0_i32_9 : i32
    scf.if %11 {
      %c0_10 = arith.constant 0 : index
      %c0_11 = arith.constant 0 : index
      %12 = vector.load %arg6[%c0_10, %c0_11] : memref<16x96xf32, #tpu.memory_space<vmem>>, vector<16x96xf32>
      %c0_12 = arith.constant 0 : index
      %c0_13 = arith.constant 0 : index
      %13 = vector.load %arg5[%c0_12, %c0_13] : memref<16x96xf32, #tpu.memory_space<vmem>>, vector<16x96xf32>
      tpu.vector_store %arg5[%c0_12, %c0_13], %12 {strides = array<i32>} : memref<16x96xf32, #tpu.memory_space<vmem>>, vector<16x96xf32>,
    } else {
    }
    return
  }
  func.func @transform_0(%arg0: i32, %arg1: i32, %arg2: i32) -> (i32, i32) {
    %c0_i32 = arith.constant 0 : i32
    return %arg0, %arg2 : i32, i32
  }
  func.func @transform_1(%arg0: i32, %arg1: i32, %arg2: i32) -> (i32, i32) {
    %c0_i32 = arith.constant 0 : i32
    return %arg2, %arg1 : i32, i32
  }
  func.func @transform_2(%arg0: i32, %arg1: i32, %arg2: i32) -> (i32, i32) {
    %c0_i32 = arith.constant 0 : i32
    return %arg0, %arg1 : i32, i32
  }
}

</mosaic_0001>

<bundles_post_ra>
// kernel: tpu_custom_call.1
= control target key start
LH: loop header
LB: loop body
LE: loop exit
PB: predicated region body
PF: predicated region fallthrough
CT: control target
= control target key end

     0   :  { %7 = vsyncpa [#allocation4], 0  ;;  %s344_s0 = inlined_call_operand.hbm [shape: f32[16,32], index: 0, kind: input, shape index: {}]   ;;  %s345_s1 = inlined_call_operand.hbm [shape: f32[32,96], index: 1, kind: input, shape index: {}]   ;;  %s346_s2 = inlined_call_operand.hbm [shape: f32[16,96], index: 2, kind: output, shape index: {}]  }
   0x1   :  { %8 = vsyncpa [#allocation7], 0 }
   0x2   :  { %9 = vsyncpa [#allocation5], 0  ;;  %s272_s9 = smov [#allocation3]   ;;  %s200_s13 = scalar_lea.hbm %s344_s0, 256 }
   0x3   :  { %s15_s10 = sshll.u32 %s272_s9, 4  ;;  %p201_p0 = scmp.ne.s32.totalorder %s344_s0, %s200_s13  ;;  %s16_s10 = int_to_ptr.vmem [resolvable:$true] %s15_s10 }
   0x4   :  { %p204_p1 = scmp.lt.u32.totalorder %s200_s13, %s344_s0 }
   0x6   :  { %p206_p2 = pnand %p204_p1, %p201_p0 }
   0x8   :  { %209 = shalt.err (!%p206_p2)
}
   0x9   :  { %s210_s18 = scalar_lea.vmem %s16_s10, 256  ;;  %p215_p4 = scmp.lt.s32.totalorder %s16_s10, %s16_s10 }
   0xa   :  { %p211_p3 = scmp.ne.s32.totalorder %s16_s10, %s210_s18  ;;  %p216_p5 = scmp.lt.s32.totalorder %s210_s18, %s210_s18 }
   0xc   :  { %p217_p6 = por %p216_p5, %p215_p4 }
   0xe   :  { %p218_p7 = pnand %p217_p6, %p211_p3 }
  0x10   :  { %221 = shalt.err (!%p218_p7)
}
  0x11   :  { %s273_s19 = smov 128   ;;  %s274_s20 = smov 8  }
  0x12   :  { %21 = dma.hbm_to_vmem [thread:$0]  %s344_s0, 256, %s16_s10, [#allocation4], %s273_s19, %s273_s19, %s274_s20  }
  0x13   :  { %s275_s23 = smov [#allocation6]   ;;  %s222_s27 = scalar_lea.hbm %s345_s1, 512 }
  0x14   :  { %s27_s24 = sshll.u32 %s275_s23, 4  ;;  %p223_p8 = scmp.ne.s32.totalorder %s345_s1, %s222_s27  ;;  %s28_s24 = int_to_ptr.vmem [resolvable:$true] %s27_s24 }
  0x15   :  { %p226_p9 = scmp.lt.u32.totalorder %s222_s27, %s345_s1 }
  0x17   :  { %p228_p10 = pnand %p226_p9, %p223_p8 }
  0x19   :  { %231 = shalt.err (!%p228_p10)
}
  0x1a   :  { %s232_s4 = scalar_lea.vmem %s28_s24, 512  ;;  %p237_p12 = scmp.lt.s32.totalorder %s28_s24, %s28_s24 }
  0x1b   :  { %p233_p11 = scmp.ne.s32.totalorder %s28_s24, %s232_s4  ;;  %p238_p13 = scmp.lt.s32.totalorder %s232_s4, %s232_s4 }
  0x1d   :  { %p239_p0 = por %p238_p13, %p237_p12 }
  0x1f   :  { %p240_p1 = pnand %p239_p0, %p233_p11 }
  0x21   :  { %243 = shalt.err (!%p240_p1)
}
  0x22   :  { %33 = dma.hbm_to_vmem [thread:$0]  %s345_s1, 512, %s28_s24, [#allocation7], %s273_s19, %s273_s19, %s274_s20  }
  0x23   :  { %266 = dma.done.wait [#allocation4], 256  }
  0x24   :  { %267 = vsyncadd [#allocation4], 4294967040 }
  0x25   :  { %268 = dma.done.wait [#allocation7], 512  }
  0x26   :  { %269 = vsyncadd [#allocation7], 4294966784  ;;  %vm44_vm0 = vcmask 785408   ;;  %v276_v0 = vmov 0.0   ;;  %vm55_vm1 = vcmask 261120   ;;  %v51_v1 = vld [vmem:[#allocation6] sm:$0xff] }
  0x27   :  { %46 = vst.msk [vmem:[#allocation2 + $0x8] sm:$0xff] %vm44_vm0, %v276_v0  ;;  %45 = vst.msk [vmem:[#allocation2] sm:$0xff] %vm44_vm0, %v276_v0  ;;  %v52_v2 = vld [vmem:[#allocation6 + $0x8] sm:$0xff]  ;;  %v53_v3 = vld [vmem:[#allocation6 + $0x10] sm:$0xff]  ;;  %s277_s1 = smov [#allocation8]  }
  0x28   :  { %v186_v4 = vpack.c.bf16 %v52_v2, %v51_v1  ;;  %v54_v5 = vld [vmem:[#allocation6 + $0x18] sm:$0xff]  ;;  %v49_v6 = vld [vmem:[#allocation3] sm:$0xff]  ;;  %s154_s6 = sshll.u32 %s277_s1, 4  ;;  %s155_s6 = int_to_ptr.vmem [resolvable:$true] %s154_s6 }
  0x29   :  { %v190_v7 = vpack.c.bf16 %v54_v5, %v53_v3  ;;  %183 = vmatprep.mubr.msk.f32.mxu0 %vm55_vm1, %v49_v6  ;;  %v50_v8 = vld [vmem:[#allocation3 + $0x8] sm:$0xff]  ;;  %s244_s7 = scalar_lea.vmem %s155_s6, 256  ;;  %p249_p3 = scmp.lt.s32.totalorder %s155_s6, %s155_s6 }
  0x2a   :  { %187 = vmatprep.subr.bf16.mxu0 %v186_v4  ;;  %p245_p2 = scmp.ne.s32.totalorder %s155_s6, %s244_s7  ;;  %p250_p4 = scmp.lt.s32.totalorder %s244_s7, %s244_s7 }
  0x2b   :  { %189 = vmatpush3.bf16.msra.mxu0 %v186_v4 }
  0x2c   :  { %191 = vmatprep.subr.bf16.mxu0 %v190_v7  ;;  %p251_p5 = por %p250_p4, %p249_p3 }
  0x2e   :  { %v48_v9 = vld [vmem:[#allocation2 + $0x8] sm:$0xff]  ;;  %v47_v10 = vld [vmem:[#allocation2] sm:$0xff]  ;;  %p252_p6 = pnand %p251_p5, %p245_p2 }
  0x2f   :  { %193 = vmatpush3.bf16.msra.mxu0 %v190_v7 }
  0x32   :  { %184 = vmatmul.mubr.msk.f32.vlgmr.msra.gmra.mrb[0].mxu0 %vm55_vm1, %v50_v8 }
 0x105   :  { %v185_v11 = vpop.f32.mrb[0].mxu0 }
 0x106   :  { %v138_v12 = vadd.f32 %v185_v11, %v48_v9  ;;  %v128_v13 = vpop.f32.mrb[1].mxu0 }
 0x107   :  { %v137_v14 = vadd.f32 %v128_v13, %v47_v10 }
 0x108   :  { %141 = vst.msk [vmem:[#allocation2 + $0x8] sm:$0xff] %vm44_vm0, %v138_v12 }
 0x109   :  { %140 = vst.msk [vmem:[#allocation2] sm:$0xff] %vm44_vm0, %v137_v14 }
 0x10f   :  { %v146_v15 = vld [vmem:[#allocation2 + $0x8] sm:$0xff] }
 0x110   :  { %v145_v16 = vld [vmem:[#allocation2] sm:$0xff]  ;;  %148 = vst.msk [vmem:[#allocation8 + $0x8] sm:$0xff] %vm44_vm0, %v146_v15 }
 0x111   :  { %147 = vst.msk [vmem:[#allocation8] sm:$0xff] %vm44_vm0, %v145_v16 }
 0x112   :  { %255 = shalt.err (!%p252_p6)
}
 0x113   :  { %s256_s10 = scalar_lea.hbm %s346_s2, 256 }
 0x114   :  { %p257_p7 = scmp.ne.s32.totalorder %s346_s2, %s256_s10  ;;  %p260_p8 = scmp.lt.u32.totalorder %s256_s10, %s346_s2 }
 0x116   :  { %p262_p9 = pnand %p260_p8, %p257_p7 }
 0x118   :  { %265 = shalt.err (!%p262_p9)
}
 0x119   :  { %160 = dma.vmem_to_hbm [thread:$0]  %s155_s6, 256, %s346_s2, [#allocation5], %s273_s19, %s273_s19, %s274_s20  }
 0x11a   :  { %270 = dma.done.wait [#allocation5], 256  }
 0x11b   :  { %271 = vsyncadd [#allocation5], 4294967040 }
 0x11c   :  { %164 = vsyncpa [#allocation4], 1 }
 0x11d   :  { %165 = vsyncpa [#allocation7], 1 }
 0x11e   :  { %166 = vsyncpa [#allocation5], 1 }

</bundles_post_ra>
